<compile_context>
chip_gen: v7x
topology: tpu7x:2x2x1
jax: 0.10.0
libtpu: 0.0.40
codegen_flags: <defaults>
</compile_context>

<pallas_src>
import functools

import jax
import jax.numpy as jnp
import numpy as np
from jax.experimental import pallas as pl
from jax.experimental.pallas import tpu as pltpu


def gat_module_kernel(x_ref, vecs_ref, wqkv_ref, fcw_ref,
                      o_ref, acc_ref, head_ref, *, n_head, temperature):
    """One grid step == one full GAT_layer applied to the resident x state."""
    l = pl.program_id(0)

    # Load the module input into the resident accumulator on the first layer.
    @pl.when(l == 0)
    def _():
        acc_ref[...] = x_ref[...].astype(jnp.float32)

    x = acc_ref[...]                                      # (B, d_model) f32

    gamma = vecs_ref[0, 0:1, :]                           # (1, d_model)
    beta = vecs_ref[0, 1:2, :]                            # (1, d_model)
    fc_b = vecs_ref[0, 2:3, :]                            # (1, d_model)

    # ---- LayerNorm (biased variance, eps=1e-5, affine) ----
    mean = jnp.mean(x, axis=-1, keepdims=True)
    var = jnp.mean((x - mean) ** 2, axis=-1, keepdims=True)
    xn = (x - mean) * jax.lax.rsqrt(var + 1e-5)
    xn = xn * gamma + beta

    # ---- fused q/k/v projection: one MXU matmul ----
    qkv = jnp.dot(xn, wqkv_ref[0], preferred_element_type=jnp.float32)  # (B, 3*d_feat)
    d_feat = wqkv_ref.shape[2] // 3
    dh = d_feat // n_head

    inv_temp = 1.0 / temperature                          # static Python float
    q = qkv[:, 0 * d_feat:1 * d_feat] * inv_temp          # scale q once
    k = qkv[:, 1 * d_feat:2 * d_feat]
    v = qkv[:, 2 * d_feat:3 * d_feat]

    # ---- per-head scaled dot-product attention (n_head static & small) ----
    for h in range(n_head):
        lo, hi = h * dh, (h + 1) * dh
        qh, kh, vh = q[:, lo:hi], k[:, lo:hi], v[:, lo:hi]      # (B, dh)
        # q @ k^T without materializing a transpose (NT dot_general).
        s = jax.lax.dot_general(qh, kh, (((1,), (1,)), ((), ())),
                                preferred_element_type=jnp.float32)  # (B, B)
        # LeakyReLU(0.2) then softmax over the last dim.
        s = jnp.where(s > 0, s, 0.2 * s)
        s = s - jnp.max(s, axis=-1, keepdims=True)
        p = jnp.exp(s)
        p = p * pl.reciprocal(jnp.sum(p, axis=-1, keepdims=True), approx=True)
        # TODO(synk): attention dropout (p=0.1) omitted -> eval-mode identity.
        head_ref[:, lo:hi] = jnp.dot(p, vh, preferred_element_type=jnp.float32)

    # ---- output projection + bias + residual ----
    out = jnp.dot(head_ref[...], fcw_ref[0],
                  preferred_element_type=jnp.float32) + fc_b
    # TODO(synk): output dropout (p=0.1) omitted -> eval-mode identity.
    new_x = out + x
    acc_ref[...] = new_x

    # Write the HBM output only after the last layer.
    @pl.when(l == pl.num_programs(0) - 1)
    def _():
        o_ref[...] = new_x.astype(o_ref.dtype)


def gat_module_forward(x, params, *, n_head, temperature):
    """Whole GAT_module (all layers) in one pallas_call, grid over layers."""
    B, d_model = x.shape
    num_layers, _, three_d_feat = params["wqkv"].shape
    d_feat = three_d_feat // 3

    # gamma | beta | fc_b fused along axis 1 -> one DMA per layer step.
    vecs = jnp.concatenate(
        [params["gamma"], params["beta"], params["fc_b"]], axis=1)  # (L, 3, d_model)

    kernel = functools.partial(gat_module_kernel, n_head=n_head,
                               temperature=temperature)

    grid_spec = pltpu.PrefetchScalarGridSpec(
        num_scalar_prefetch=0,
        grid=(num_layers,),
        in_specs=[
            pl.BlockSpec((B, d_model), lambda l: (0, 0)),                 # x
            pl.BlockSpec((1, 3, d_model), lambda l: (l, 0, 0)),           # gamma|beta|fc_b
            pl.BlockSpec((1, d_model, 3 * d_feat), lambda l: (l, 0, 0)),  # wqkv
            pl.BlockSpec((1, d_feat, d_model), lambda l: (l, 0, 0)),      # fc_w
        ],
        out_specs=pl.BlockSpec((B, d_model), lambda l: (0, 0)),
        scratch_shapes=[
            pltpu.VMEM((B, d_model), jnp.float32),   # resident x accumulator
            pltpu.VMEM((B, d_feat), jnp.float32),    # per-head output staging
        ],
    )

    return pl.pallas_call(
        kernel,
        out_shape=jax.ShapeDtypeStruct((B, d_model), jnp.float32),
        grid_spec=grid_spec,
        compiler_params=pltpu.CompilerParams(
            dimension_semantics=("arbitrary",),       # layer axis carries state
            vmem_limit_bytes=32 * 1024 * 1024,        # fits v7x's 64 MiB budget
        ),
    )(x, vecs, params["wqkv"], params["fc_w"])


# ------------------------ pure-JAX reference (sanity) ------------------------
def _ref_module(x, p, n_head, temperature):
    num_layers = p["wqkv"].shape[0]
    for l in range(num_layers):
        mean = jnp.mean(x, axis=-1, keepdims=True)
        var = jnp.mean((x - mean) ** 2, axis=-1, keepdims=True)
        xn = (x - mean) / jnp.sqrt(var + 1e-5) * p["gamma"][l] + p["beta"][l]
        qkv = xn @ p["wqkv"][l]
        d_feat = qkv.shape[-1] // 3
        q, k, v = (qkv[:, :d_feat], qkv[:, d_feat:2 * d_feat],
                   qkv[:, 2 * d_feat:])
        B = x.shape[0]
        dh = d_feat // n_head
        qh = q.reshape(B, n_head, dh).transpose(1, 0, 2)
        kh = k.reshape(B, n_head, dh).transpose(1, 0, 2)
        vh = v.reshape(B, n_head, dh).transpose(1, 0, 2)
        attn = jnp.einsum("hbd,hcd->hbc", qh, kh) / temperature
        attn = jnp.where(attn > 0, attn, 0.2 * attn)
        attn = jax.nn.softmax(attn, axis=-1)
        out = jnp.einsum("hbc,hcd->hbd", attn, vh)
        out = out.transpose(1, 0, 2).reshape(B, d_feat)
        x = out @ p["fc_w"][l] + p["fc_b"][l] + x
    return x


# ------------------------------ parameter init -------------------------------
def init_params(key, num_layers, d_model, d_feat):
    std_qkv = float(np.sqrt(2.0 / (d_model + d_feat)))   # nn.init.normal_
    std_fc = float(np.sqrt(2.0 / (d_feat + d_model)))    # xavier_normal_
    bound_b = float(1.0 / np.sqrt(d_feat))               # default Linear bias init
    k1, k2, k3 = jax.random.split(key, 3)
    return {
        "gamma": jnp.ones((num_layers, 1, d_model), jnp.float32),
        "beta": jnp.zeros((num_layers, 1, d_model), jnp.float32),
        # stored as (in, out) so the kernel does x @ W; q|k|v fused on lanes
        "wqkv": std_qkv * jax.random.normal(
            k1, (num_layers, d_model, 3 * d_feat), jnp.float32),
        "fc_w": std_fc * jax.random.normal(
            k2, (num_layers, d_feat, d_model), jnp.float32),
        "fc_b": bound_b * jax.random.uniform(
            k3, (num_layers, 1, d_model), jnp.float32, minval=-1.0, maxval=1.0),
    }


if __name__ == "__main__":
    # Small shapes consistent with GAT_module: B nodes, each with d_model feats;
    # the reshape in GAT_layer.forward requires d_feat == d_model (and both
    # divisible by n_head).
    B, d_model, d_feat, n_head, num_layers = 8, 32, 32, 4, 4
    temperature = float(np.power(d_feat, 0.5))

    key = jax.random.PRNGKey(0)
    key, kx = jax.random.split(key)
    x = jax.random.normal(kx, (B, d_model), jnp.float32)
    params = init_params(key, num_layers, d_model, d_feat)

    ref = _ref_module(x, params, n_head, temperature)

    fwd = jax.jit(functools.partial(gat_module_forward, n_head=n_head,
                                    temperature=temperature))
    out = jax.block_until_ready(fwd(x, params))

    # Tolerance slightly loosened for pl.reciprocal(approx=True) in softmax.
    np.testing.assert_allclose(np.asarray(out), np.asarray(ref),
                               rtol=5e-3, atol=5e-3)
    print("KERNEL_OK")
</pallas_src>

<mosaic_0001>
module attributes {stable_mosaic.version = 11 : i64} {
  func.func @gat_module_kernel(%arg0: i32, %arg1: memref<8x32xf32, #tpu.memory_space<vmem>>, %arg2: memref<1x3x32xf32, #tpu.memory_space<vmem>>, %arg3: memref<1x32x96xf32, #tpu.memory_space<vmem>>, %arg4: memref<1x32x32xf32, #tpu.memory_space<vmem>>, %arg5: memref<8x32xf32, #tpu.memory_space<vmem>>, %arg6: memref<8x32xf32, #tpu.memory_space<vmem>>, %arg7: memref<8x32xf32, #tpu.memory_space<vmem>>) attributes {dimension_semantics = [#tpu.dimension_semantics<arbitrary>], iteration_bounds = array<i64: 4>, scalar_prefetch = 0 : i64, scratch_operands = 2 : i64, tpu.core_type = #tpu.core_type<tc>, window_params = [{pipeline_mode = #tpu.pipeline_mode<synchronous>, transform_indices = @transform_0, window_bounds = array<i64: 8, 32>}, {transform_indices = @transform_1, window_bounds = array<i64: 1, 3, 32>}, {transform_indices = @transform_2, window_bounds = array<i64: 1, 32, 96>}, {transform_indices = @transform_3, window_bounds = array<i64: 1, 32, 32>}, {pipeline_mode = #tpu.pipeline_mode<synchronous>, transform_indices = @transform_4, window_bounds = array<i64: 8, 32>}]} {
    %c0_i32 = arith.constant 0 : i32
    %0 = arith.cmpi eq, %arg0, %c0_i32 : i32
    %1 = arith.extui %0 : i1 to i32
    %c0_i32_0 = arith.constant 0 : i32
    %2 = arith.cmpi ne, %1, %c0_i32_0 : i32
    scf.if %2 {
      %c0_56 = arith.constant 0 : index
      %c0_57 = arith.constant 0 : index
      %135 = vector.load %arg1[%c0_56, %c0_57] : memref<8x32xf32, #tpu.memory_space<vmem>>, vector<8x32xf32>
      %c0_58 = arith.constant 0 : index
      %c0_59 = arith.constant 0 : index
      %136 = vector.load %arg6[%c0_58, %c0_59] : memref<8x32xf32, #tpu.memory_space<vmem>>, vector<8x32xf32>
      tpu.vector_store %arg6[%c0_58, %c0_59], %135 {strides = array<i32>} : memref<8x32xf32, #tpu.memory_space<vmem>>, vector<8x32xf32>,
    } else {
    }
    %c0 = arith.constant 0 : index
    %c0_1 = arith.constant 0 : index
    %3 = vector.load %arg6[%c0, %c0_1] : memref<8x32xf32, #tpu.memory_space<vmem>>, vector<8x32xf32>
    %c0_2 = arith.constant 0 : index
    %c0_3 = arith.constant 0 : index
    %c0_4 = arith.constant 0 : index
    %4 = vector.load %arg2[%c0_2, %c0_3, %c0_4] : memref<1x3x32xf32, #tpu.memory_space<vmem>>, vector<1x1x32xf32>
    %5 = vector.shape_cast %4 : vector<1x1x32xf32> to vector<1x32xf32>
    %c0_5 = arith.constant 0 : index
    %c1 = arith.constant 1 : index
    %c0_6 = arith.constant 0 : index
    %6 = vector.load %arg2[%c0_5, %c1, %c0_6] : memref<1x3x32xf32, #tpu.memory_space<vmem>>, vector<1x1x32xf32>
    %7 = vector.shape_cast %6 : vector<1x1x32xf32> to vector<1x32xf32>
    %c0_7 = arith.constant 0 : index
    %c2 = arith.constant 2 : index
    %c0_8 = arith.constant 0 : index
    %8 = vector.load %arg2[%c0_7, %c2, %c0_8] : memref<1x3x32xf32, #tpu.memory_space<vmem>>, vector<1x1x32xf32>
    %9 = vector.shape_cast %8 : vector<1x1x32xf32> to vector<1x32xf32>
    %cst = arith.constant dense<0.000000e+00> : vector<8xf32>
    %10 = vector.multi_reduction <add>, %3, %cst [1] : vector<8x32xf32> to vector<8xf32>
    %11 = vector.shape_cast %10 : vector<8xf32> to vector<8x1xf32>
    %cst_9 = arith.constant 3.200000e+01 : f32
    %12 = vector.broadcast %cst_9 : f32 to vector<8x1xf32>
    %13 = arith.divf %11, %12 : vector<8x1xf32>
    %14 = vector.broadcast %13 : vector<8x1xf32> to vector<8x32xf32>
    %15 = arith.subf %3, %14 : vector<8x32xf32>
    %16 = arith.mulf %15, %15 : vector<8x32xf32>
    %cst_10 = arith.constant dense<0.000000e+00> : vector<8xf32>
    %17 = vector.multi_reduction <add>, %16, %cst_10 [1] : vector<8x32xf32> to vector<8xf32>
    %18 = vector.shape_cast %17 : vector<8xf32> to vector<8x1xf32>
    %cst_11 = arith.constant 3.200000e+01 : f32
    %19 = vector.broadcast %cst_11 : f32 to vector<8x1xf32>
    %20 = arith.divf %18, %19 : vector<8x1xf32>
    %21 = vector.broadcast %13 : vector<8x1xf32> to vector<8x32xf32>
    %22 = arith.subf %3, %21 : vector<8x32xf32>
    %cst_12 = arith.constant 9.99999974E-6 : f32
    %23 = vector.broadcast %cst_12 : f32 to vector<8x1xf32>
    %24 = arith.addf %20, %23 : vector<8x1xf32>
    %25 = math.rsqrt %24 : vector<8x1xf32>
    %26 = vector.broadcast %25 : vector<8x1xf32> to vector<8x32xf32>
    %27 = arith.mulf %22, %26 : vector<8x32xf32>
    %28 = vector.broadcast %5 : vector<1x32xf32> to vector<8x32xf32>
    %29 = arith.mulf %27, %28 : vector<8x32xf32>
    %30 = vector.broadcast %7 : vector<1x32xf32> to vector<8x32xf32>
    %31 = arith.addf %29, %30 : vector<8x32xf32>
    %c0_13 = arith.constant 0 : index
    %c0_14 = arith.constant 0 : index
    %c0_15 = arith.constant 0 : index
    %32 = vector.load %arg3[%c0_13, %c0_14, %c0_15] : memref<1x32x96xf32, #tpu.memory_space<vmem>>, vector<1x32x96xf32>
    %33 = vector.shape_cast %32 : vector<1x32x96xf32> to vector<32x96xf32>
    %cst_16 = arith.constant dense<0.000000e+00> : vector<8x96xf32>
    %34 = tpu.matmul %31, %33, %cst_16 {dimension_numbers = #tpu.dot_dimension_numbers<[1], [0], [0], [1], [0, 0, 1, 1], [], []>} : vector<8x32xf32>, vector<32x96xf32>, vector<8x96xf32> -> vector<8x96xf32>
    %35 = vector.extract_strided_slice %34 {offsets = [0, 0], sizes = [8, 32], strides = [1, 1]} : vector<8x96xf32> to vector<8x32xf32>
    %cst_17 = arith.constant 0.176776692 : f32
    %36 = vector.broadcast %cst_17 : f32 to vector<8x32xf32>
    %37 = arith.mulf %35, %36 : vector<8x32xf32>
    %38 = vector.extract_strided_slice %34 {offsets = [0, 32], sizes = [8, 32], strides = [1, 1]} : vector<8x96xf32> to vector<8x32xf32>
    %39 = vector.extract_strided_slice %34 {offsets = [0, 64], sizes = [8, 32], strides = [1, 1]} : vector<8x96xf32> to vector<8x32xf32>
    %40 = vector.extract_strided_slice %37 {offsets = [0, 0], sizes = [8, 8], strides = [1, 1]} : vector<8x32xf32> to vector<8x8xf32>
    %41 = vector.extract_strided_slice %38 {offsets = [0, 0], sizes = [8, 8], strides = [1, 1]} : vector<8x32xf32> to vector<8x8xf32>
    %42 = vector.extract_strided_slice %39 {offsets = [0, 0], sizes = [8, 8], strides = [1, 1]} : vector<8x32xf32> to vector<8x8xf32>
    %cst_18 = arith.constant dense<0.000000e+00> : vector<8x8xf32>
    %43 = tpu.matmul %40, %41, %cst_18 {dimension_numbers = #tpu.dot_dimension_numbers<[1], [1], [0], [0], [0, 0, 1, 0], [], []>} : vector<8x8xf32>, vector<8x8xf32>, vector<8x8xf32> -> vector<8x8xf32>
    %cst_19 = arith.constant 0.000000e+00 : f32
    %44 = vector.broadcast %cst_19 : f32 to vector<8x8xf32>
    %45 = arith.cmpf ogt, %43, %44 : vector<8x8xf32>
    %cst_20 = arith.constant 2.000000e-01 : f32
    %46 = vector.broadcast %cst_20 : f32 to vector<8x8xf32>
    %47 = arith.mulf %46, %43 : vector<8x8xf32>
    %48 = arith.select %45, %43, %47 : vector<8x8xi1>, vector<8x8xf32>
    %cst_21 = arith.constant dense<0xFF800000> : vector<8xf32>
    %49 = vector.multi_reduction <maximumf>, %48, %cst_21 [1] : vector<8x8xf32> to vector<8xf32>
    %50 = vector.shape_cast %49 : vector<8xf32> to vector<8x1xf32>
    %51 = vector.broadcast %50 : vector<8x1xf32> to vector<8x8xf32>
    %52 = arith.subf %48, %51 : vector<8x8xf32>
    %53 = math.exp %52 : vector<8x8xf32>
    %cst_22 = arith.constant dense<0.000000e+00> : vector<8xf32>
    %54 = vector.multi_reduction <add>, %53, %cst_22 [1] : vector<8x8xf32> to vector<8xf32>
    %55 = vector.shape_cast %54 : vector<8xf32> to vector<8x1xf32>
    %56 = tpu.reciprocal %55 {approx = true} : vector<8x1xf32> -> vector<8x1xf32>
    %57 = vector.broadcast %56 : vector<8x1xf32> to vector<8x8xf32>
    %58 = arith.mulf %53, %57 : vector<8x8xf32>
    %cst_23 = arith.constant dense<0.000000e+00> : vector<8x8xf32>
    %59 = tpu.matmul %58, %42, %cst_23 {dimension_numbers = #tpu.dot_dimension_numbers<[1], [0], [0], [1], [0, 0, 1, 1], [], []>} : vector<8x8xf32>, vector<8x8xf32>, vector<8x8xf32> -> vector<8x8xf32>
    %c0_24 = arith.constant 0 : index
    %c0_25 = arith.constant 0 : index
    %60 = vector.load %arg7[%c0_24, %c0_25] : memref<8x32xf32, #tpu.memory_space<vmem>>, vector<8x8xf32>
    tpu.vector_store %arg7[%c0_24, %c0_25], %59 {strides = array<i32>} : memref<8x32xf32, #tpu.memory_space<vmem>>, vector<8x8xf32>,
    %61 = vector.extract_strided_slice %37 {offsets = [0, 8], sizes = [8, 8], strides = [1, 1]} : vector<8x32xf32> to vector<8x8xf32>
    %62 = vector.extract_strided_slice %38 {offsets = [0, 8], sizes = [8, 8], strides = [1, 1]} : vector<8x32xf32> to vector<8x8xf32>
    %63 = vector.extract_strided_slice %39 {offsets = [0, 8], sizes = [8, 8], strides = [1, 1]} : vector<8x32xf32> to vector<8x8xf32>
    %cst_26 = arith.constant dense<0.000000e+00> : vector<8x8xf32>
    %64 = tpu.matmul %61, %62, %cst_26 {dimension_numbers = #tpu.dot_dimension_numbers<[1], [1], [0], [0], [0, 0, 1, 0], [], []>} : vector<8x8xf32>, vector<8x8xf32>, vector<8x8xf32> -> vector<8x8xf32>
    %cst_27 = arith.constant 0.000000e+00 : f32
    %65 = vector.broadcast %cst_27 : f32 to vector<8x8xf32>
    %66 = arith.cmpf ogt, %64, %65 : vector<8x8xf32>
    %cst_28 = arith.constant 2.000000e-01 : f32
    %67 = vector.broadcast %cst_28 : f32 to vector<8x8xf32>
    %68 = arith.mulf %67, %64 : vector<8x8xf32>
    %69 = arith.select %66, %64, %68 : vector<8x8xi1>, vector<8x8xf32>
    %cst_29 = arith.constant dense<0xFF800000> : vector<8xf32>
    %70 = vector.multi_reduction <maximumf>, %69, %cst_29 [1] : vector<8x8xf32> to vector<8xf32>
    %71 = vector.shape_cast %70 : vector<8xf32> to vector<8x1xf32>
    %72 = vector.broadcast %71 : vector<8x1xf32> to vector<8x8xf32>
    %73 = arith.subf %69, %72 : vector<8x8xf32>
    %74 = math.exp %73 : vector<8x8xf32>
    %cst_30 = arith.constant dense<0.000000e+00> : vector<8xf32>
    %75 = vector.multi_reduction <add>, %74, %cst_30 [1] : vector<8x8xf32> to vector<8xf32>
    %76 = vector.shape_cast %75 : vector<8xf32> to vector<8x1xf32>
    %77 = tpu.reciprocal %76 {approx = true} : vector<8x1xf32> -> vector<8x1xf32>
    %78 = vector.broadcast %77 : vector<8x1xf32> to vector<8x8xf32>
    %79 = arith.mulf %74, %78 : vector<8x8xf32>
    %cst_31 = arith.constant dense<0.000000e+00> : vector<8x8xf32>
    %80 = tpu.matmul %79, %63, %cst_31 {dimension_numbers = #tpu.dot_dimension_numbers<[1], [0], [0], [1], [0, 0, 1, 1], [], []>} : vector<8x8xf32>, vector<8x8xf32>, vector<8x8xf32> -> vector<8x8xf32>
    %c0_32 = arith.constant 0 : index
    %c8 = arith.constant 8 : index
    %81 = vector.load %arg7[%c0_32, %c8] : memref<8x32xf32, #tpu.memory_space<vmem>>, vector<8x8xf32>
    tpu.vector_store %arg7[%c0_32, %c8], %80 {strides = array<i32>} : memref<8x32xf32, #tpu.memory_space<vmem>>, vector<8x8xf32>,
    %82 = vector.extract_strided_slice %37 {offsets = [0, 16], sizes = [8, 8], strides = [1, 1]} : vector<8x32xf32> to vector<8x8xf32>
    %83 = vector.extract_strided_slice %38 {offsets = [0, 16], sizes = [8, 8], strides = [1, 1]} : vector<8x32xf32> to vector<8x8xf32>
    %84 = vector.extract_strided_slice %39 {offsets = [0, 16], sizes = [8, 8], strides = [1, 1]} : vector<8x32xf32> to vector<8x8xf32>
    %cst_33 = arith.constant dense<0.000000e+00> : vector<8x8xf32>
    %85 = tpu.matmul %82, %83, %cst_33 {dimension_numbers = #tpu.dot_dimension_numbers<[1], [1], [0], [0], [0, 0, 1, 0], [], []>} : vector<8x8xf32>, vector<8x8xf32>, vector<8x8xf32> -> vector<8x8xf32>
    %cst_34 = arith.constant 0.000000e+00 : f32
    %86 = vector.broadcast %cst_34 : f32 to vector<8x8xf32>
    %87 = arith.cmpf ogt, %85, %86 : vector<8x8xf32>
    %cst_35 = arith.constant 2.000000e-01 : f32
    %88 = vector.broadcast %cst_35 : f32 to vector<8x8xf32>
    %89 = arith.mulf %88, %85 : vector<8x8xf32>
    %90 = arith.select %87, %85, %89 : vector<8x8xi1>, vector<8x8xf32>
    %cst_36 = arith.constant dense<0xFF800000> : vector<8xf32>
    %91 = vector.multi_reduction <maximumf>, %90, %cst_36 [1] : vector<8x8xf32> to vector<8xf32>
    %92 = vector.shape_cast %91 : vector<8xf32> to vector<8x1xf32>
    %93 = vector.broadcast %92 : vector<8x1xf32> to vector<8x8xf32>
    %94 = arith.subf %90, %93 : vector<8x8xf32>
    %95 = math.exp %94 : vector<8x8xf32>
    %cst_37 = arith.constant dense<0.000000e+00> : vector<8xf32>
    %96 = vector.multi_reduction <add>, %95, %cst_37 [1] : vector<8x8xf32> to vector<8xf32>
    %97 = vector.shape_cast %96 : vector<8xf32> to vector<8x1xf32>
    %98 = tpu.reciprocal %97 {approx = true} : vector<8x1xf32> -> vector<8x1xf32>
    %99 = vector.broadcast %98 : vector<8x1xf32> to vector<8x8xf32>
    %100 = arith.mulf %95, %99 : vector<8x8xf32>
    %cst_38 = arith.constant dense<0.000000e+00> : vector<8x8xf32>
    %101 = tpu.matmul %100, %84, %cst_38 {dimension_numbers = #tpu.dot_dimension_numbers<[1], [0], [0], [1], [0, 0, 1, 1], [], []>} : vector<8x8xf32>, vector<8x8xf32>, vector<8x8xf32> -> vector<8x8xf32>
    %c0_39 = arith.constant 0 : index
    %c16 = arith.constant 16 : index
    %102 = vector.load %arg7[%c0_39, %c16] : memref<8x32xf32, #tpu.memory_space<vmem>>, vector<8x8xf32>
    tpu.vector_store %arg7[%c0_39, %c16], %101 {strides = array<i32>} : memref<8x32xf32, #tpu.memory_space<vmem>>, vector<8x8xf32>,
    %103 = vector.extract_strided_slice %37 {offsets = [0, 24], sizes = [8, 8], strides = [1, 1]} : vector<8x32xf32> to vector<8x8xf32>
    %104 = vector.extract_strided_slice %38 {offsets = [0, 24], sizes = [8, 8], strides = [1, 1]} : vector<8x32xf32> to vector<8x8xf32>
    %105 = vector.extract_strided_slice %39 {offsets = [0, 24], sizes = [8, 8], strides = [1, 1]} : vector<8x32xf32> to vector<8x8xf32>
    %cst_40 = arith.constant dense<0.000000e+00> : vector<8x8xf32>
    %106 = tpu.matmul %103, %104, %cst_40 {dimension_numbers = #tpu.dot_dimension_numbers<[1], [1], [0], [0], [0, 0, 1, 0], [], []>} : vector<8x8xf32>, vector<8x8xf32>, vector<8x8xf32> -> vector<8x8xf32>
    %cst_41 = arith.constant 0.000000e+00 : f32
    %107 = vector.broadcast %cst_41 : f32 to vector<8x8xf32>
    %108 = arith.cmpf ogt, %106, %107 : vector<8x8xf32>
    %cst_42 = arith.constant 2.000000e-01 : f32
    %109 = vector.broadcast %cst_42 : f32 to vector<8x8xf32>
    %110 = arith.mulf %109, %106 : vector<8x8xf32>
    %111 = arith.select %108, %106, %110 : vector<8x8xi1>, vector<8x8xf32>
    %cst_43 = arith.constant dense<0xFF800000> : vector<8xf32>
    %112 = vector.multi_reduction <maximumf>, %111, %cst_43 [1] : vector<8x8xf32> to vector<8xf32>
    %113 = vector.shape_cast %112 : vector<8xf32> to vector<8x1xf32>
    %114 = vector.broadcast %113 : vector<8x1xf32> to vector<8x8xf32>
    %115 = arith.subf %111, %114 : vector<8x8xf32>
    %116 = math.exp %115 : vector<8x8xf32>
    %cst_44 = arith.constant dense<0.000000e+00> : vector<8xf32>
    %117 = vector.multi_reduction <add>, %116, %cst_44 [1] : vector<8x8xf32> to vector<8xf32>
    %118 = vector.shape_cast %117 : vector<8xf32> to vector<8x1xf32>
    %119 = tpu.reciprocal %118 {approx = true} : vector<8x1xf32> -> vector<8x1xf32>
    %120 = vector.broadcast %119 : vector<8x1xf32> to vector<8x8xf32>
    %121 = arith.mulf %116, %120 : vector<8x8xf32>
    %cst_45 = arith.constant dense<0.000000e+00> : vector<8x8xf32>
    %122 = tpu.matmul %121, %105, %cst_45 {dimension_numbers = #tpu.dot_dimension_numbers<[1], [0], [0], [1], [0, 0, 1, 1], [], []>} : vector<8x8xf32>, vector<8x8xf32>, vector<8x8xf32> -> vector<8x8xf32>
    %c0_46 = arith.constant 0 : index
    %c24 = arith.constant 24 : index
    %123 = vector.load %arg7[%c0_46, %c24] : memref<8x32xf32, #tpu.memory_space<vmem>>, vector<8x8xf32>
    tpu.vector_store %arg7[%c0_46, %c24], %122 {strides = array<i32>} : memref<8x32xf32, #tpu.memory_space<vmem>>, vector<8x8xf32>,
    %c0_47 = arith.constant 0 : index
    %c0_48 = arith.constant 0 : index
    %124 = vector.load %arg7[%c0_47, %c0_48] : memref<8x32xf32, #tpu.memory_space<vmem>>, vector<8x32xf32>
    %c0_49 = arith.constant 0 : index
    %c0_50 = arith.constant 0 : index
    %c0_51 = arith.constant 0 : index
    %125 = vector.load %arg4[%c0_49, %c0_50, %c0_51] : memref<1x32x32xf32, #tpu.memory_space<vmem>>, vector<1x32x32xf32>
    %126 = vector.shape_cast %125 : vector<1x32x32xf32> to vector<32x32xf32>
    %cst_52 = arith.constant dense<0.000000e+00> : vector<8x32xf32>
    %127 = tpu.matmul %124, %126, %cst_52 {dimension_numbers = #tpu.dot_dimension_numbers<[1], [0], [0], [1], [0, 0, 1, 1], [], []>} : vector<8x32xf32>, vector<32x32xf32>, vector<8x32xf32> -> vector<8x32xf32>
    %128 = vector.broadcast %9 : vector<1x32xf32> to vector<8x32xf32>
    %129 = arith.addf %127, %128 : vector<8x32xf32>
    %130 = arith.addf %129, %3 : vector<8x32xf32>
    %c0_53 = arith.constant 0 : index
    %c0_54 = arith.constant 0 : index
    %131 = vector.load %arg6[%c0_53, %c0_54] : memref<8x32xf32, #tpu.memory_space<vmem>>, vector<8x32xf32>
    tpu.vector_store %arg6[%c0_53, %c0_54], %130 {strides = array<i32>} : memref<8x32xf32, #tpu.memory_space<vmem>>, vector<8x32xf32>,
    %c3_i32 = arith.constant 3 : i32
    %132 = arith.cmpi eq, %arg0, %c3_i32 : i32
    %133 = arith.extui %132 : i1 to i32
    %c0_i32_55 = arith.constant 0 : i32
    %134 = arith.cmpi ne, %133, %c0_i32_55 : i32
    scf.if %134 {
      %c0_56 = arith.constant 0 : index
      %c0_57 = arith.constant 0 : index
      %135 = vector.load %arg5[%c0_56, %c0_57] : memref<8x32xf32, #tpu.memory_space<vmem>>, vector<8x32xf32>
      tpu.vector_store %arg5[%c0_56, %c0_57], %130 {strides = array<i32>} : memref<8x32xf32, #tpu.memory_space<vmem>>, vector<8x32xf32>,
    } else {
    }
    return
  }
  func.func @transform_0(%arg0: i32) -> (i32, i32) {
    %c0_i32 = arith.constant 0 : i32
    %c0_i32_0 = arith.constant 0 : i32
    %c0_i32_1 = arith.constant 0 : i32
    return %c0_i32, %c0_i32_0 : i32, i32
  }
  func.func @transform_1(%arg0: i32) -> (i32, i32, i32) {
    %c0_i32 = arith.constant 0 : i32
    %c0_i32_0 = arith.constant 0 : i32
    %c0_i32_1 = arith.constant 0 : i32
    return %arg0, %c0_i32, %c0_i32_0 : i32, i32, i32
  }
  func.func @transform_2(%arg0: i32) -> (i32, i32, i32) {
    %c0_i32 = arith.constant 0 : i32
    %c0_i32_0 = arith.constant 0 : i32
    %c0_i32_1 = arith.constant 0 : i32
    return %arg0, %c0_i32, %c0_i32_0 : i32, i32, i32
  }
  func.func @transform_3(%arg0: i32) -> (i32, i32, i32) {
    %c0_i32 = arith.constant 0 : i32
    %c0_i32_0 = arith.constant 0 : i32
    %c0_i32_1 = arith.constant 0 : i32
    return %arg0, %c0_i32, %c0_i32_0 : i32, i32, i32
  }
  func.func @transform_4(%arg0: i32) -> (i32, i32) {
    %c0_i32 = arith.constant 0 : i32
    %c0_i32_0 = arith.constant 0 : i32
    %c0_i32_1 = arith.constant 0 : i32
    return %c0_i32, %c0_i32_0 : i32, i32
  }
}

</mosaic_0001>

<bundles_post_ra>
// kernel: gat_module_forward.1
= control target key start
LH: loop header
LB: loop body
LE: loop exit
PB: predicated region body
PF: predicated region fallthrough
CT: control target
= control target key end

     0   :  { %9 = vsyncpa [#allocation5], 0  ;;  %s1939_s0 = inlined_call_operand.vmem [shape: f32[8,32], index: 0, kind: input, shape index: {}]   ;;  %s1940_s1 = inlined_call_operand.vmem [shape: f32[4,3,32], index: 1, kind: input, shape index: {}]   ;;  %s1941_s2 = inlined_call_operand.hbm [shape: f32[4,32,96], index: 2, kind: input, shape index: {}]   ;;  %s1942_s3 = inlined_call_operand.hbm [shape: f32[4,32,32], index: 3, kind: input, shape index: {}]   ;;  %s1943_s4 = inlined_call_operand.hbm [shape: f32[8,32], index: 4, kind: output, shape index: {}]  }
   0x1   :  { %11 = vsyncpa [#allocation5 + $0x1], 0 }
   0x2   :  { %12 = vsyncpa [#allocation8], 0 }
   0x3   :  { %14 = vsyncpa [#allocation8 + $0x1], 0 }
   0x4   :  { %15 = vsyncpa [#allocation6], 0  ;;  %s1651_s15 = smov 0   ;;  %s1653_s16 = smov 0  }
   0x5   :  { %s1655_s17 = smov 0   ;;  %s1657_s18 = smov 0  }
   0x6 LB: > { %s1670_s19 = sadd.s32 4294967295, %s1602_s18   ;;  %s1673_s20 = sadd.s32 1, %s1602_s18   ;;  %s1602_s18 = sphi %s1657_s18, %s1953_s18   ;;  %s1598_s17 = sphi %s1655_s17, %s1952_s17   ;;  %s1594_s16 = sphi %s1653_s16, %s1951_s16   ;;  %s1590_s15 = sphi %s1651_s15, %s1950_s15  }
   0x7   : > { %s72_s21 = ssub.s32 %s1602_s18, %s1673_s20  ;;  %s75_s22 = sadd.s32 1, %s1598_s17 }
   0x8   : > { %p73_p0 = scmp.eq.s32.totalorder %s72_s21, 0  ;;  %p82_p1 = scmp.ne.s32.totalorder %s1598_s17, %s1594_s16 }
   0x9   : > { %p83_p2 = scmp.eq.s32.totalorder %s1602_s18, 0  ;;  %p88_p3 = scmp.ne.s32.totalorder %s1594_s16, %s1590_s15 }
   0xa   : > { %s1683_s23 = scalar_select %p73_p0, %s1598_s17, %s75_s22  }
   0xb   : > { %p84_p4 = por %p83_p2, %p82_p1  ;;  %p89_p5 = scmp.eq.s32.totalorder %s1670_s19, 0 }
   0xc   : > { %p1401_p6 = scmp.lt.s32.totalorder %s1602_s18, 4  ;;  %s1692_s25 = sand.u32 1, %s1598_s17  }
   0xd   : > { %p1687_p7 = por %p89_p5, %p88_p3  ;;  %s1251_s26 = sshll.u32 %s1692_s25, 5 }
   0xe   : > { %s1284_s27 = sshll.u32 %s1602_s18, 9  ;;  %s173_s5 = scalar_lea.vmem [#allocation4], %s1251_s26 }
   0xf   : > { %s1945_s24 = scalar_select %p1687_p7, 1, 0 }
  0x10   : > { %s1701_s30 = scalar_lea.hbm %s1941_s2, %s1284_s27  ;;  %s180_s6 = sshll.u32 %s173_s5, 4  ;;  %s1705_s6 = int_to_ptr.vmem [resolvable:$true] %s180_s6 }
  0x11   : > { %p1707_p8 = pnand %p1401_p6, %p84_p4  ;;  %s170_s8 = scalar_lea.sflag [#allocation5], %s1692_s25 }
  0x12   : > { %s1474_s9 = scalar_lea.hbm %s1701_s30, 512  ;;  %s1479_s12 = scalar_lea.hbm %s1941_s2, 2048 }
  0x13   : > { %p1475_p10 = scmp.ne.s32.totalorder %s1701_s30, %s1474_s9  ;;  %p1476_p11 = pneg %p1707_p8 }
  0x14   : > { %p1480_p0 = scmp.lt.u32.totalorder %s1701_s30, %s1941_s2  ;;  %p1481_p1 = scmp.lt.u32.totalorder %s1479_s12, %s1474_s9 }
  0x15   : > { %p1477_p12 = pnand %p1476_p11, %p1475_p10  ;;  %p1483_p3 = scmp.lt.u32.totalorder %s1474_s9, %s1701_s30 }
  0x16   : > { %p1482_p2 = por %p1481_p1, %p1480_p0 }
  0x17   : > { %p1478_p13 = pneg %p1477_p12 }
  0x18   : > { %p1484_p4 = por %p1483_p3, %p1482_p2 }
  0x1a   : > { %p1485_p5 = pnand %p1484_p4, %p1478_p13 }
  0x1c   : > { %1488 = shalt.err (!%p1485_p5)
}
  0x1d   : > { %s1489_s15 = scalar_lea.vmem %s1705_s6, 512  ;;  %s1604_s21 = smov [#allocation4]  }
  0x1e   : > { %p1490_p6 = scmp.ne.s32.totalorder %s1705_s6, %s1489_s15  ;;  %s1494_s22 = sshll.u32 %s1604_s21, 4  ;;  %s1495_s22 = int_to_ptr.vmem [resolvable:$false] %s1494_s22 }
  0x1f   : > { %s1496_s28 = scalar_lea.vmem %s1495_s22, 1024  ;;  %p1497_p9 = scmp.lt.s32.totalorder %s1705_s6, %s1495_s22 }
  0x20   : > { %p1492_p10 = pnand %p1490_p6, %p1476_p11  ;;  %p1498_p0 = scmp.lt.s32.totalorder %s1496_s28, %s1489_s15 }
  0x22   : > { %p1493_p12 = pneg %p1492_p10  ;;  %p1499_p1 = por %p1498_p0, %p1497_p9 }
  0x24   : > { %p1500_p2 = pnand %p1499_p1, %p1493_p12 }
  0x26   : > { %1503 = shalt.err (!%p1500_p2)
}
  0x27   : > { %s1605_s29 = smov 128   ;;  %s1606_s5 = smov 8  }
  0x28   : > { %1397 = dma.hbm_to_vmem [thread:$0]  (!%p1707_p8), %s1701_s30, 512, %s1705_s6, %s170_s8, %s1605_s29, %s1605_s29, %s1606_s5  }
  0x29   : > { %p209_p9 = scmp.lt.s32.totalorder %s1602_s18, 5  ;;  %s1749_s11 = scalar_lea.hbm %s1942_s3, %s1284_s27 }
  0x2a   : > { %p1947_p13 = scmp.ge.s32.totalorder %s1602_s18, 1  ;;  %s194_s13 = scalar_lea.vmem [#allocation7], %s1251_s26 }
  0x2b   : > { %s201_s14 = sshll.u32 %s194_s13, 4  ;;  %s191_s30 = scalar_lea.sflag [#allocation8], %s1692_s25  ;;  %s1759_s14 = int_to_ptr.vmem [resolvable:$true] %s201_s14 }
  0x2c   : > { %p1753_p3 = pnand %p1947_p13, %p209_p9  ;;  %s1504_s6 = scalar_lea.hbm %s1749_s11, 512 }
  0x2d   : > { %p1505_p4 = scmp.ne.s32.totalorder %s1749_s11, %s1504_s6  ;;  %s1509_s8 = scalar_lea.hbm %s1942_s3, 2048 }
  0x2e   : > { %p1510_p10 = scmp.lt.u32.totalorder %s1749_s11, %s1942_s3  ;;  %p1511_p12 = scmp.lt.u32.totalorder %s1509_s8, %s1504_s6 }
  0x2f   : > { %p1507_p5 = pnand %p1505_p4, %p1476_p11  ;;  %p1513_p1 = scmp.lt.u32.totalorder %s1504_s6, %s1749_s11 }
  0x30   : > { %p1512_p0 = por %p1511_p12, %p1510_p10 }
  0x31   : > { %p1508_p6 = pneg %p1507_p5 }
  0x32   : > { %p1514_p2 = por %p1513_p1, %p1512_p0 }
  0x34   : > { %p1515_p9 = pnand %p1514_p2, %p1508_p6 }
  0x36   : > { %1518 = shalt.err (!%p1515_p9)
}
  0x37   : > { %s1519_s26 = scalar_lea.vmem %s1759_s14, 512  ;;  %s1607_s22 = smov [#allocation7]  }
  0x38   : > { %p1520_p13 = scmp.ne.s32.totalorder %s1759_s14, %s1519_s26  ;;  %s1524_s28 = sshll.u32 %s1607_s22, 4  ;;  %s1525_s28 = int_to_ptr.vmem [resolvable:$false] %s1524_s28 }
  0x39   : > { %s1526_s9 = scalar_lea.vmem %s1525_s28, 1024  ;;  %p1527_p7 = scmp.lt.s32.totalorder %s1759_s14, %s1525_s28 }
  0x3a   : > { %p1522_p4 = pnand %p1520_p13, %p1476_p11  ;;  %p1528_p10 = scmp.lt.s32.totalorder %s1526_s9, %s1519_s26 }
  0x3c   : > { %p1523_p5 = pneg %p1522_p4  ;;  %p1529_p12 = por %p1528_p10, %p1527_p7 }
  0x3e   : > { %p1530_p0 = pnand %p1529_p12, %p1523_p5 }
  0x40   : > { %1533 = shalt.err (!%p1530_p0)
}
  0x41   : > { %1400 = dma.hbm_to_vmem [thread:$0]  (!%p1707_p8), %s1749_s11, 512, %s1759_s14, %s191_s30, %s1605_s29, %s1605_s29, %s1606_s5  }
  0x42   : > { %213 = sbr.rel (%p1753_p3) target bundleno = 2377 (0x949), region = 36  ;;  %s215_s10 = sand.u32 (!%p1753_p3), 1, %s1594_s16  }
  0x43   : > { %s1258_s13 = sshll.u32 (!%p1753_p3), %s215_s10, 5  ;;  %s216_s6 = scalar_lea.sflag (!%p1753_p3), [#allocation5], %s215_s10 }
  0x44   : > { %s1793_s18 = scalar_lea.vmem (!%p1753_p3), [#allocation4], %s1258_s13  ;;  %p1949_p7 = scmp.ne.s32.totalorder (!%p1753_p3), %s1945_s24, 0 }
  0x49   : > { %1577 = dma.done.wait (%p1949_p7), %s216_s6, 512  }
  0x4a   : > { %1579 = vsyncadd (%p1949_p7), %s216_s6, 4294966784  ;;  %s225_s25 = scalar_lea.sflag [#allocation8], %s215_s10  ;;  %s1799_s7 = scalar_lea.vmem [#allocation7], %s1258_s13 }
  0x4b   : > { %1581 = dma.done.wait (%p1949_p7), %s225_s25, 512  }
  0x4c   : > { %1583 = vsyncadd (%p1949_p7), %s225_s25, 4294966784  ;;  %p257_p8 = scmp.lt.s32.totalorder %s1670_s19, 3  ;;  %p1261_p11 = scmp.ne.s32.totalorder %s1670_s19, 0 }
  0x4d   : > { %v265_v0 = vld [vmem:[%s1939_s0] sm:$0xff] (!%p1261_p11)  ;;  %vm266_vm0 = vcmask (!%p1261_p11), 261120  }
  0x4e   : > { %s258_s29 = scalar_select %p257_p8, %s1670_s19, 3 }
  0x4f   : > { %264 = sbr.rel (%p1261_p11) target bundleno = 86 (0x56), region = 48  ;;  %267 = vst.msk [vmem:[#allocation2] sm:$0xff] (!%p1261_p11), %vm266_vm0, %v265_v0 }
  0x50   : > { %s1260_s5 = sshll.u32 %s258_s29, 2 }
  0x51   : > { %s1810_s14 = scalar_lea.vmem %s1940_s1, %s1260_s5 }
  0x56 PF: > { %v1816_v1 = vld [vmem:[#allocation2] sm:$0xff]  ;;  %vm272_vm1 = vcmask 261120   ;;  %v297_v8 = vld [vmem:[%s1793_s18] sm:$0xff]  ;;  %v298_v9 = vld [vmem:[%s1793_s18 + $0x8] sm:$0xff]  ;;  %v1608_v11 = vmov 0.0|0.0   ;;  %vm1609_vm2 = vmmov 0  }
  0x57   : > { %v273_v2 = vsel %vm272_vm1, %v1816_v1, 0.0  ;;  %v299_v10 = vld [vmem:[%s1793_s18 + $0x10] sm:$0xff]  ;;  %1374 = vmatprep.subr.bf16.mxu0 %v1608_v11  ;;  %v1375_v12 = vpack.c.bf16 %v298_v9, %v297_v8  ;;  %v300_v13 = vld [vmem:[%s1793_s18 + $0x18] sm:$0xff]  ;;  %v1610_v14 = vmov 0.0   ;;  %s1611_s24 = smov 64   ;;  %s1612_s8 = smov 96  }
  0x58   : > { %274 = vadd.xlane.f32.xlu0 %v273_v2  ;;  %1320 = vmatprep.mubr.msk.f32.mxu0 %vm1609_vm2, %v1610_v14  ;;  %v1378_v15 = vpack.c.bf16 %v300_v13, %v299_v10  ;;  %v1262_v20 = vld [vmem:[%s1810_s14] ss:$0 sm:$0xff]  ;;  %v1263_v22 = vld [vmem:[%s1810_s14 + $0x1] ss:$0 sm:$0xff]  ;;  %s1613_s15 = smov 88   ;;  %s1614_s21 = smov 120  }
  0x59   : > { %1323 = vmatprep.subr.mxu1 %v1610_v14  ;;  %1325 = vmatprep.mubr.msk.f32.mxu1 %vm1609_vm2, %v1610_v14  ;;  %vm378_vm3 = vcmask 64512   ;;  %s1615_s26 = smov 80   ;;  %s1616_s22 = smov 112   ;;  %vm717_vm8 = vcmask 130112   ;;  %vm891_vm9 = vcmask 195712   ;;  %vm1065_vm10 = vcmask 261312  }
  0x5a   : > { %1376 = vmatpush3.bf16.msra.mxu0 %v1375_v12  ;;  %s1617_s28 = smov 72   ;;  %s1618_s9 = smov 104  }
  0x5b   : > { %1377 = vmatprep.subr.bf16.mxu0 %v1608_v11  ;;  %s1619_s10 = smov 48   ;;  %s1620_s13 = smov 56  }
  0x5c   : > { %s1621_s6 = smov 40   ;;  %s1622_s18 = smov 8  }
  0x5d   : > { %s1623_s25 = smov 16   ;;  %s1624_s29 = smov 24  }
  0x5e   : > { %1379 = vmatpush3.bf16.msra.mxu0 %v1378_v15  ;;  %p1279_p3 = scmp.ne.s32.totalorder %s1670_s19, 3 }
  0x5f   : > { %1343 = vmatprep.subr.mxu0 %v1610_v14 }
  0xe5   : > { %v275_v3 = vpop.xlane.xlu0 %274 }
  0xe6   : > { %v277_v4 = vmul.f32 0.03125, %v275_v3 }
  0xe8   : > { %v278_v5 = vsub.f32 %v1816_v1, %v277_v4 }
  0xea   : > { %v279_v6 = vmul.f32 %v278_v5, %v278_v5 }
  0xec   : > { %v280_v7 = vsel %vm272_vm1, %v279_v6, 0.0 }
  0xed   : > { %281 = vadd.xlane.f32.xlu0 %v280_v7 }
 0x17a   : > { %v282_v16 = vpop.xlane.xlu0 %281 }
 0x17b   : > { %v283_v17 = vmul.f32 0.03125, %v282_v16 }
 0x17d   : > { %v284_v18 = vadd.f32 1e-05, %v283_v17 }
 0x17f   : > { %1456 = vrsqrt.f32 %v284_v18 }
 0x189   : > { %v1457_v19 = vpop.eup %1456 }
 0x18a   : > { %v286_v21 = vmul.f32 %v1457_v19, %v278_v5 }
 0x18c   : > { %v291_v23 = vmul.f32 %v1262_v20, %v286_v21 }
 0x18e   : > { %v296_v24 = vadd.f32 %v1263_v22, %v291_v23 }
 0x190   : > { %1321 = vmatmul.mubr.msk.f32.vlgmr.msra.gmra.mrb[0].mxu0 %vm272_vm1, %v296_v24 }
 0x191   : > { %1345 = vmatprep.mubr.msk.f32.mxu0 %vm1609_vm2, %v1610_v14 }
 0x263   : > { %v1839_v25 = vpop.f32.mrb[0].mxu0 }
 0x264   : > { %468 = vrot.lane.b32.xlu0 %v1839_v25, %s1611_s24  ;;  %376 = vrot.lane.b32.xlu1 %v1839_v25, %s1612_s8  ;;  %v1322_v26 = vpop.f32.mrb[1].mxu0  ;;  %v374_v27 = vmul.f32 0.17677669, %v1839_v25 }
 0x268   : > { %547 = vrot.lane.b32.xlu0 %v1839_v25, %s1613_s15 }
 0x26c   : > { %545 = vrot.lane.b32.xlu0 %v374_v27, %s1614_s21 }
 0x2d6   : > { %v377_v28 = vpop.permute.xlu1 %376  ;;  %v469_v29 = vpop.permute.xlu0 %468 }
 0x2d7   : > { %1324 = vmatpush3.xpose.msk.msra.mxu1 %vm378_vm3, %v377_v28 }
 0x2d8   : > { %1328 = vmatprep.subr.mxu1 %v1610_v14 }
 0x2da   : > { %1326 = vmatmul.mubr.msk.f32.vlgmr.msra.gmra.mrb[0].mxu1 %vm378_vm3, %v374_v27  ;;  %v548_v41 = vpop.permute.xlu0 %547 }
 0x2db   : > { %1329 = vmatpush3.msra.mxu1 %v469_v29  ;;  %1330 = vmatprep.mubr.msk.f32.mxu1 %vm1609_vm2, %v1610_v14 }
 0x2dc   : > { %1333 = vmatprep.subr.mxu1 %v1610_v14 }
 0x2de   : > { %v546_v42 = vpop.permute.xlu0 %545 }
 0x3ad   : > { %v450_v30 = vpop.f32.mrb[0].mxu1 }
 0x3ae   : > { %vm454_vm4 = vcmp.gt.f32.partialorder %v450_v30, 0.0  ;;  %v455_v31 = vmul.f32 0.2, %v450_v30  ;;  %v1327_v32 = vpop.f32.mrb[1].mxu1 }
 0x3af   : > { %v1068_v32 = vld [vmem:[%s1799_s7] sm:$0xff] }
 0x3b0   : > { %v456_v33 = vsel %vm454_vm4, %v450_v30, %v455_v31 }
 0x3b1   : > { %v457_v34 = vsel %vm378_vm3, %v456_v33, -inf }
 0x3b2   : > { %458 = vmax.xlane.f32.xlu1 %v457_v34 }
 0x3c3   : > { %721 = vrot.lane.b32.xlu1 %v1839_v25, %s1615_s26 }
 0x43f   : > { %v459_v35 = vpop.xlane.xlu1 %458 }
 0x440   : > { %v460_v36 = vsub.f32 %v456_v33, %v459_v35  ;;  %v1069_v33 = vld [vmem:[%s1799_s7 + $0x8] sm:$0xff]  ;;  %v1070_v35 = vld [vmem:[%s1799_s7 + $0x10] sm:$0xff] }
 0x441   : > { %v1381_v34 = vpack.c.bf16 %v1069_v33, %v1068_v32 }
 0x442   : > { %v461_v37 = vmul.f32 1.442695, %v460_v36  ;;  %v1071_v36 = vld [vmem:[%s1799_s7 + $0x18] sm:$0xff] }
 0x443   : > { %v722_v38 = vpop.permute.xlu1 %721 }
 0x444   : > { %1458 = vpow2.f32 %v461_v37  ;;  %1344 = vmatpush3.xpose.msk.msra.mxu0 %vm378_vm3, %v722_v38  ;;  %v1384_v37 = vpack.c.bf16 %v1071_v36, %v1070_v35 }
 0x445   : > { %1353 = vmatprep.subr.mxu0 %v1610_v14 }
 0x44e   : > { %v1459_v39 = vpop.eup %1458 }
 0x44f   : > { %v463_v40 = vsel %vm378_vm3, %v1459_v39, 0.0 }
 0x450   : > { %464 = vadd.xlane.f32.xlu0 %v463_v40 }
 0x466   : > { %719 = vrot.lane.b32.xlu0 %v374_v27, %s1616_s22 }
 0x46a   : > { %895 = vrot.lane.b32.xlu0 %v1839_v25, %s1617_s28 }
 0x46e   : > { %893 = vrot.lane.b32.xlu0 %v374_v27, %s1618_s9 }
 0x4dd   : > { %v465_v43 = vpop.xlane.xlu0 %464 }
 0x4de   : > { %1460 = vrcp.f32 %v465_v43 }
 0x4e1   : > { %v720_v44 = vpop.permute.xlu0 %719 }
 0x4e2   : > { %1346 = vmatmul.mubr.msk.f32.vlgmr.msra.gmra.mrb[2].mxu0 %vm378_vm3, %v720_v44 }
 0x4e3   : > { %1355 = vmatprep.mubr.msk.f32.mxu0 %vm1609_vm2, %v1610_v14 }
 0x4e5   : > { %v896_v45 = vpop.permute.xlu0 %895 }
 0x4e6   : > { %1354 = vmatpush3.xpose.msk.msra.mxu0 %vm378_vm3, %v896_v45 }
 0x4e7   : > { %1380 = vmatprep.subr.bf16.mxu0 %v1608_v11 }
 0x4e8   : > { %v1461_v46 = vpop.eup %1460 }
 0x4e9   : > { %v467_v47 = vmul.f32 %v1461_v46, %v1459_v39  ;;  %v894_v48 = vpop.permute.xlu0 %893  ;;  %v1277_v46 = vld [vmem:[%s1810_s14 + $0x2] ss:$0 sm:$0xff] }
 0x4ea   : > { %1356 = vmatmul.mubr.msk.f32.vlgmr.msra.gmra.mrb[4].mxu0 %vm378_vm3, %v894_v48 }
 0x4eb   : > { %1331 = vmatmul.mubr.msk.f32.vlgmr.msra.gmra.mrb[2].mxu1 %vm378_vm3, %v467_v47  ;;  %1371 = vmatprep.mubr.msk.f32.mxu0 %vm1609_vm2, %v1610_v14 }
 0x4ec   : > { %1334 = vmatpush3.xpose.msk.msra.mxu1 %vm378_vm3, %v548_v41  ;;  %1335 = vmatprep.mubr.msk.f32.mxu1 %vm1609_vm2, %v1610_v14 }
 0x4ed   : > { %1338 = vmatprep.subr.mxu1 %v1610_v14  ;;  %1382 = vmatpush3.bf16.msra.mxu0 %v1381_v34 }
 0x4ee   : > { %1383 = vmatprep.subr.bf16.mxu0 %v1608_v11 }
 0x4ef   : > { %1336 = vmatmul.mubr.msk.f32.vlgmr.msra.gmra.mrb[4].mxu1 %vm378_vm3, %v546_v42 }
 0x4f0   : > { %1340 = vmatprep.mubr.msk.f32.mxu1 %vm1609_vm2, %v1610_v14 }
 0x4f1   : > { %1385 = vmatpush3.bf16.msra.mxu0 %v1384_v37 }
 0x5b5   : > { %v793_v49 = vpop.f32.mrb[2].mxu0 }
 0x5b6   : > { %vm797_vm5 = vcmp.gt.f32.partialorder %v793_v49, 0.0  ;;  %v798_v50 = vmul.f32 0.2, %v793_v49  ;;  %v1347_v51 = vpop.f32.mrb[3].mxu0 }
 0x5b8   : > { %v799_v52 = vsel %vm797_vm5, %v793_v49, %v798_v50 }
 0x5b9   : > { %v800_v53 = vsel %vm378_vm3, %v799_v52, -inf }
 0x5ba   : > { %801 = vmax.xlane.f32.xlu1 %v800_v53 }
 0x5bd   : > { %v967_v54 = vpop.f32.mrb[4].mxu0 }
 0x5be   : > { %v540_v55 = vpop.f32.mrb[2].mxu1  ;;  %v1357_v56 = vpop.f32.mrb[5].mxu0  ;;  %v972_v59 = vmul.f32 0.2, %v967_v54  ;;  %vm971_vm7 = vcmp.gt.f32.partialorder %v967_v54, 0.0 }
 0x5bf   : > { %544 = vst.msk [vmem:[#allocation3] sm:$0xff] %vm378_vm3, %v540_v55  ;;  %v1332_v57 = vpop.f32.mrb[3].mxu1 }
 0x5c0   : > { %v973_v0 = vsel %vm971_vm7, %v967_v54, %v972_v59 }
 0x5c1   : > { %v974_v2 = vsel %vm378_vm3, %v973_v0, -inf }
 0x5c2   : > { %v619_v58 = vpop.f32.mrb[4].mxu1 }
 0x5c3   : > { %vm623_vm6 = vcmp.gt.f32.partialorder %v619_v58, 0.0  ;;  %v624_v60 = vmul.f32 0.2, %v619_v58  ;;  %v1337_v61 = vpop.f32.mrb[5].mxu1 }
 0x5c5   : > { %v625_v62 = vsel %vm623_vm6, %v619_v58, %v624_v60 }
 0x5c6   : > { %v626_v63 = vsel %vm378_vm3, %v625_v62, -inf }
 0x5c7   : > { %627 = vmax.xlane.f32.xlu0 %v626_v63 }
 0x5cb   : > { %975 = vmax.xlane.f32.xlu0 %v974_v2 }
 0x647   : > { %v802_v3 = vpop.xlane.xlu1 %801 }
 0x648   : > { %v803_v4 = vsub.f32 %v799_v52, %v802_v3 }
 0x64a   : > { %v804_v5 = vmul.f32 1.442695, %v803_v4 }
 0x64c   : > { %1462 = vpow2.f32 %v804_v5 }
 0x654   : > { %v628_v6 = vpop.xlane.xlu0 %627 }
 0x655   : > { %v629_v7 = vsub.f32 %v625_v62, %v628_v6 }
 0x656   : > { %v1463_v8 = vpop.eup %1462 }
 0x657   : > { %v630_v9 = vmul.f32 1.442695, %v629_v7  ;;  %v806_v10 = vsel %vm378_vm3, %v1463_v8, 0.0 }
 0x658   : > { %807 = vadd.xlane.f32.xlu0 %v806_v10  ;;  %v976_v12 = vpop.xlane.xlu0 %975 }
 0x659   : > { %1464 = vpow2.f32 %v630_v9  ;;  %v977_v13 = vsub.f32 %v973_v0, %v976_v12 }
 0x65b   : > { %v978_v15 = vmul.f32 1.442695, %v977_v13 }
 0x65d   : > { %1466 = vpow2.f32 %v978_v15 }
 0x663   : > { %v1465_v16 = vpop.eup %1464 }
 0x664   : > { %v632_v17 = vsel %vm378_vm3, %v1465_v16, 0.0 }
 0x665   : > { %633 = vadd.xlane.f32.xlu0 %v632_v17 }
 0x667   : > { %v1467_v18 = vpop.eup %1466 }
 0x668   : > { %v980_v19 = vsel %vm378_vm3, %v1467_v18, 0.0 }
 0x669   : > { %981 = vadd.xlane.f32.xlu1 %v980_v19 }
 0x67a   : > { %811 = vrot.lane.b32.xlu1 %v1839_v25, %s1619_s10 }
 0x67b   : > { %637 = vrot.lane.b32.xlu0 %v1839_v25, %s1620_s13 }
 0x67e   : > { %985 = vrot.lane.b32.xlu1 %v1839_v25, %s1621_s6 }
 0x6e5   : > { %v808_v20 = vpop.xlane.xlu0 %807 }
 0x6f2   : > { %v634_v21 = vpop.xlane.xlu0 %633 }
 0x6f3   : > { %1468 = vrcp.f32 %v634_v21 }
 0x6f4   : > { %1470 = vrcp.f32 %v808_v20 }
 0x6f6   : > { %v982_v22 = vpop.xlane.xlu1 %981  ;;  %v638_v23 = vpop.permute.xlu0 %637 }
 0x6f7   : > { %1339 = vmatpush3.msra.mxu1 %v638_v23  ;;  %1472 = vrcp.f32 %v982_v22 }
 0x6f8   : > { %1348 = vmatprep.subr.mxu1 %v1610_v14 }
 0x6fa   : > { %v812_v27 = vpop.permute.xlu1 %811 }
 0x6fd   : > { %v1469_v24 = vpop.eup %1468 }
 0x6fe   : > { %v636_v26 = vmul.f32 %v1469_v24, %v1465_v16  ;;  %v1471_v28 = vpop.eup %1470  ;;  %v986_v30 = vpop.permute.xlu1 %985 }
 0x6ff   : > { %v810_v25 = vmul.f32 %v1471_v28, %v1463_v8 }
 0x700   : > { %1341 = vmatmul.mubr.msk.f32.vlgmr.msra.gmra.mrb[6].mxu1 %vm378_vm3, %v636_v26 }
 0x701   : > { %1349 = vmatpush3.msra.mxu1 %v812_v27  ;;  %1350 = vmatprep.mubr.msk.f32.mxu1 %vm1609_vm2, %v1610_v14  ;;  %v1473_v29 = vpop.eup %1472 }
 0x702   : > { %1358 = vmatprep.subr.mxu1 %v1610_v14  ;;  %v984_v31 = vmul.f32 %v1473_v29, %v1467_v18 }
 0x704   : > { %1351 = vmatmul.mubr.msk.f32.vlgmr.msra.gmra.mrb[8].mxu1 %vm378_vm3, %v810_v25 }
 0x705   : > { %1359 = vmatpush3.msra.mxu1 %v986_v30  ;;  %1360 = vmatprep.mubr.msk.f32.mxu1 %vm1609_vm2, %v1610_v14 }
 0x708   : > { %1361 = vmatmul.mubr.msk.f32.vlgmr.msra.gmra.mrb[10].mxu1 %vm378_vm3, %v984_v31 }
 0x7d3   : > { %v709_v38 = vpop.f32.mrb[6].mxu1 }
 0x7d4   : > { %714 = vrot.lane.b32.xlu1 %v709_v38, %s1622_s18  ;;  %v1342_v39 = vpop.f32.mrb[7].mxu1 }
 0x7d7   : > { %v883_v40 = vpop.f32.mrb[8].mxu1 }
 0x7d8   : > { %888 = vrot.lane.b32.xlu0 %v883_v40, %s1623_s25  ;;  %v1352_v14 = vpop.f32.mrb[9].mxu1 }
 0x7db   : > { %v1057_v41 = vpop.f32.mrb[10].mxu1 }
 0x7dc   : > { %1062 = vrot.lane.b32.xlu1 %v1057_v41, %s1624_s29  ;;  %v1362_v42 = vpop.f32.mrb[11].mxu1 }
 0x846   : > { %v715_v43 = vpop.permute.xlu1 %714 }
 0x847   : > { %718 = vst.msk [vmem:[#allocation3] sm:$0xff] %vm717_vm8, %v715_v43 }
 0x84a   : > { %v889_v44 = vpop.permute.xlu0 %888 }
 0x84b   : > { %892 = vst.msk [vmem:[#allocation3] sm:$0xff] %vm891_vm9, %v889_v44 }
 0x84e   : > { %v1063_v11 = vpop.permute.xlu1 %1062 }
 0x84f   : > { %1066 = vst.msk [vmem:[#allocation3] sm:$0xff] %vm1065_vm10, %v1063_v11 }
 0x856   : > { %v1067_v45 = vld [vmem:[#allocation3] sm:$0xff] }
 0x857   : > { %1372 = vmatmul.mubr.msk.f32.vlgmr.msra.gmra.mrb[6].mxu0 %vm272_vm1, %v1067_v45 }
 0x929   : > { %1154 = sbr.rel (%p1279_p3) target bundleno = 2352 (0x930), region = 52 }
 0x92a   : > { %v1145_v47 = vpop.f32.mrb[6].mxu0 }
 0x92b   : > { %v1146_v48 = vadd.f32 %v1277_v46, %v1145_v47  ;;  %v1373_v49 = vpop.f32.mrb[7].mxu0 }
 0x92d   : > { %v1149_v50 = vadd.f32 %v1146_v48, %v1816_v1 }
 0x92f   : > { %1150 = vst.msk [vmem:[#allocation2] sm:$0xff] %vm272_vm1, %v1149_v50  ;;  %1155 = vst.msk [vmem:[#allocation9] sm:$0xff] (!%p1279_p3), %vm272_vm1, %v1149_v50 }
 0x930 PF: > { %p1402_p6 = scmp.eq.s32.totalorder %s1670_s19, 3  ;;  %s1625_s7 = smov [#allocation9]  }
 0x931   : > { %s1163_s5 = sshll.u32 %s1625_s7, 4  ;;  %s1164_s5 = int_to_ptr.vmem [resolvable:$true] %s1163_s5 }
 0x932   : > { %s1534_s11 = scalar_lea.vmem %s1164_s5, 128  ;;  %p1541_p13 = scmp.lt.s32.totalorder %s1164_s5, %s1164_s5 }
 0x933   : > { %p1535_p1 = scmp.ne.s32.totalorder %s1164_s5, %s1534_s11  ;;  %p1542_p4 = scmp.lt.s32.totalorder %s1534_s11, %s1534_s11 }
 0x935   : > { %p1536_p2 = pnand %p1535_p1, %p1402_p6  ;;  %p1543_p5 = por %p1542_p4, %p1541_p13 }
 0x937   : > { %p1537_p9 = pneg %p1536_p2 }
 0x939   : > { %p1544_p10 = pnand %p1543_p5, %p1537_p9 }
 0x93b   : > { %1547 = shalt.err (!%p1544_p10)
}
 0x93c   : > { %s1548_s30 = scalar_lea.hbm %s1943_s4, 128 }
 0x93d   : > { %p1549_p12 = scmp.ne.s32.totalorder %s1943_s4, %s1548_s30  ;;  %p1554_p8 = scmp.lt.u32.totalorder %s1548_s30, %s1943_s4 }
 0x93f   : > { %p1550_p0 = pnand %p1549_p12, %p1402_p6 }
 0x941   : > { %p1551_p7 = pneg %p1550_p0 }
 0x943   : > { %p1556_p11 = pnand %p1554_p8, %p1551_p7 }
 0x945   : > { %1559 = shalt.err (!%p1556_p11)
}
 0x946   : > { %1391 = dma.vmem_to_hbm [thread:$0]  (%p1402_p6), %s1164_s5, 128, %s1943_s4, [#allocation6]  }
 0x947   : > { %1585 = dma.done.wait (%p1402_p6), [#allocation6], 128  }
 0x948   : > { %1587 = vsyncadd (%p1402_p6), [#allocation6], 4294967168 }
 0x949 PF: > { %p18_p3 = scmp.ge.s32.totalorder %s1673_s20, 6   ;;  %s1950_s15 = smov %s1594_s16 }
 0x94a   : > { %s1951_s16 = smov %s1598_s17  ;;  %s1952_s17 = smov %s1683_s23 }
 0x94b   : > { %s1953_s18 = smov %s1673_s20  ;;  %20 = sbr.rel (!%p18_p3) target bundleno = 6 (0x6), region = 97 }
 0x952   :  { %1176 = vsyncpa [#allocation5], 1 }
 0x953   :  { %1178 = vsyncpa [#allocation5 + $0x1], 1 }
 0x954   :  { %1179 = vsyncpa [#allocation8], 1 }
 0x955   :  { %1181 = vsyncpa [#allocation8 + $0x1], 1 }
 0x956   :  { %1182 = vsyncpa [#allocation6], 1 }
 0x957   :  { %1184 = vsyncpa [#allocation6 + $0x1], 1 }

</bundles_post_ra>
